<compile_context>
chip_gen: v7x
topology: tpu7x:2x2x1
jax: 0.10.0
libtpu: 0.0.40
codegen_flags: <defaults>
</compile_context>

<pallas_src>
import functools

import jax
import jax.numpy as jnp
from jax.experimental import pallas as pl
from jax.experimental.pallas import tpu as pltpu


# --------------------------------------------------------------------------- capacity helpers

def _vmem_capacity_bytes():
    """Physical VMEM per core; conservative (v7x, 64 MiB) fallback if the query fails."""
    try:
        cap = getattr(pltpu.get_tpu_info(), "vmem_capacity_bytes", None)
        if cap:
            return int(cap)
    except Exception:
        pass
    return 64 * 1024 * 1024


def _vmem_limit(per_step_bytes, cap):
    """Footprint-derived scoped-VMEM limit with headroom, capped below physical capacity."""
    want = int(per_step_bytes * 1.5) + (8 << 20)
    return int(max(32 << 20, min(want, int(cap * 0.75))))


def _pick_row_tile(C, Hp, Wp):
    """Rows per in-kernel tile: ~64 KiB of f32 diff working set, <= ~32 unrolled steps."""
    t = max(8, (64 * 1024) // max(1, C * Wp * 4), -(-Hp // 32))
    t = ((t + 7) // 8) * 8
    return min(t, Hp)


def _pick_ns_tile(ns, cap):
    """Patch-matrix rows per grid step (multiple of 8 unless Ns itself is small/odd)."""
    target = 1024 if cap >= (96 << 20) else 512          # larger tiles on v6e/v5e
    if ns <= target or ns % 8 != 0:
        return ns
    t = target
    while t >= 8:
        if ns % t == 0:
            return t
        t -= 8
    return ns


# ------------------------------------------------------------------------------- XLA-side glue

def _extract_strided_patches_nchw(img, p, stride):
    """img: (B, C, H, W) -> (B, Ns, C*p*p) 'valid' patches taken at `stride`.

    Flattened patch index = c*p*p + kh*p + kw (matches conv2d weight flattening)."""
    B, C, H, W = img.shape
    Hs = (H - p) // stride + 1
    Ws = (W - p) // stride + 1
    cols = []
    for kh in range(p):
        for kw in range(p):
            cols.append(img[:, :,
                            kh:kh + stride * (Hs - 1) + 1:stride,
                            kw:kw + stride * (Ws - 1) + 1:stride])   # (B, C, Hs, Ws)
    pat = jnp.stack(cols, axis=2)                    # (B, C, p*p, Hs, Ws)
    pat = pat.reshape(B, C * p * p, Hs * Ws)         # (B, K, Ns)
    return jnp.transpose(pat, (0, 2, 1)), Hs * Ws    # (B, Ns, K), Ns


def _projection_matrix(key, C, p, num_proj):
    """Random unit projection directions; 'channel_mean' patch normalization folded in
    (subtracting each filter's per-channel spatial mean == subtracting each patch's
    per-channel spatial mean before projecting)."""
    K = C * p * p
    rnd = jax.random.normal(key, (num_proj, K), dtype=jnp.float32)
    rnd = rnd / jnp.sqrt(jnp.sum(rnd * rnd, axis=1, keepdims=True))
    rnd = rnd.reshape(num_proj, C, p, p)
    rnd = rnd - jnp.mean(rnd, axis=(2, 3), keepdims=True)
    return rnd.reshape(num_proj, K).T                # (K, R)


# ----------------------------------------------------------------- kernel A: L2 + PatchRBF

def _make_l2_rbf_kernel(C, H, W, Hp, p, pad, K, l2_coef, rbf_coef, inv_two_sigma_sq, row_tile):
    def kernel(xpad_ref, ypad_ref, part_ref, h_ref):
        # TODO(synk): for W < 128 the lane axis is under-occupied; folding rows into the lane
        # dim would raise VPU occupancy but complicates the shifted adds — not done here.
        l2_sum = jnp.zeros((1, 1), jnp.float32)

        # ---- phase 1: channel reduce + horizontal 11-tap box sum, one row tile at a time ----
        for r0 in range(0, Hp, row_tile):
            tr = min(row_tile, Hp - r0)
            e = None
            for c in range(C):                                      # keep everything 2-D
                dc = xpad_ref[c, r0:r0 + tr, :] - ypad_ref[c, r0:r0 + tr, :]   # (tr, Wp)
                e = dc * dc if e is None else e + dc * dc
            h = e[:, 0:W]
            for kw in range(1, p):                                  # lane shifts (XLU)
                h = h + e[:, kw:kw + W]                             # (tr, W)
            h_ref[r0:r0 + tr, :] = h
            # L2 (MSE) contribution: centre-window rows/cols of this tile (static overlap).
            lo, hi = max(r0, pad), min(r0 + tr, pad + H)
            if hi > lo:
                l2_sum = l2_sum + jnp.sum(e[lo - r0:hi - r0, pad:pad + W], keepdims=True)

        # ---- phase 2: vertical 11-tap pass via sublane-offset loads from the VMEM scratch ----
        rbf_sum = jnp.zeros((1, 1), jnp.float32)
        for r0 in range(0, H, row_tile):
            tr = min(row_tile, H - r0)
            v = h_ref[r0:r0 + tr, :]
            for kh in range(1, p):                                  # plain vld + VALU add
                v = v + h_ref[r0 + kh:r0 + kh + tr, :]              # (tr, W) patch SSD
            rbf = 1.0 - jnp.exp(-(v * (1.0 / K)) * inv_two_sigma_sq)
            rbf_sum = rbf_sum + jnp.sum(rbf, keepdims=True)

        part_ref[...] = l2_coef * l2_sum + rbf_coef * rbf_sum
    return kernel


def _l2_rbf_partials(xpad, ypad, *, H, W, p, K, l2_coef, rbf_coef, inv_two_sigma_sq, cap):
    B, C, Hp, Wp = xpad.shape
    pad = p // 2
    row_tile = _pick_row_tile(C, Hp, Wp)
    kernel = _make_l2_rbf_kernel(C, H, W, Hp, p, pad, K, l2_coef, rbf_coef,
                                 inv_two_sigma_sq, row_tile)
    per_step = 2 * 2 * C * Hp * Wp * 4 + Hp * W * 4      # 2 imgs x 2 bufs + h scratch
    return pl.pallas_call(
        kernel,
        out_shape=jax.ShapeDtypeStruct((B, 1, 1), jnp.float32),
        grid_spec=pltpu.PrefetchScalarGridSpec(
            num_scalar_prefetch=0,
            grid=(B,),
            in_specs=[
                pl.BlockSpec((None, C, Hp, Wp), lambda b: (b, 0, 0, 0)),   # padded x
                pl.BlockSpec((None, C, Hp, Wp), lambda b: (b, 0, 0, 0)),   # padded y
            ],
            out_specs=pl.BlockSpec((None, 1, 1), lambda b: (b, 0, 0)),     # w0*L2 + w1*RBF
            scratch_shapes=[pltpu.VMEM((Hp, W), jnp.float32)],             # horizontal sums
        ),
        compiler_params=pltpu.CompilerParams(
            dimension_semantics=("parallel",),
            vmem_limit_bytes=_vmem_limit(per_step, cap),
        ),
    )(xpad, ypad)


# --------------------------------------------------------------- kernel B: SWD projections

def _proj_kernel(xs_ref, ys_ref, w_ref, px_ref, py_ref):
    w = w_ref[...]                                      # (K, R) bf16
    px_ref[...] = jnp.dot(xs_ref[...], w, preferred_element_type=jnp.float32)
    py_ref[...] = jnp.dot(ys_ref[...], w, preferred_element_type=jnp.float32)


def _project_patches(xs, ys, wproj, *, cap):
    B, Ns, K = xs.shape
    R = wproj.shape[1]
    tile = _pick_ns_tile(Ns, cap)
    nt = Ns // tile
    per_step = (2 * 2 * tile * K * 2) + (2 * K * R * 2) + (2 * 2 * tile * R * 4)
    return pl.pallas_call(
        _proj_kernel,
        out_shape=(jax.ShapeDtypeStruct((B, Ns, R), jnp.float32),
                   jax.ShapeDtypeStruct((B, Ns, R), jnp.float32)),
        grid_spec=pltpu.PrefetchScalarGridSpec(
            num_scalar_prefetch=0,
            grid=(B, nt),
            in_specs=[
                pl.BlockSpec((None, tile, K), lambda b, t: (b, t, 0)),   # x patches (bf16)
                pl.BlockSpec((None, tile, K), lambda b, t: (b, t, 0)),   # y patches (bf16)
                pl.BlockSpec((K, R), lambda b, t: (0, 0)),               # projection filters
            ],
            out_specs=[
                pl.BlockSpec((None, tile, R), lambda b, t: (b, t, 0)),   # proj(x), lane-dense
                pl.BlockSpec((None, tile, R), lambda b, t: (b, t, 0)),   # proj(y), lane-dense
            ],
        ),
        compiler_params=pltpu.CompilerParams(
            dimension_semantics=("parallel", "parallel"),
            vmem_limit_bytes=_vmem_limit(per_step, cap),
        ),
    )(xs, ys, wproj)


# ------------------------------------------------------------------------------ public wrapper

@functools.partial(jax.jit, static_argnames=(
    "num_proj", "patch_size", "stride", "rbf_patch_size", "rbf_sigma", "weights"))
def swd_pp_loss(x, y, key=None, *, num_proj=128, patch_size=11, stride=5,
                rbf_patch_size=11, rbf_sigma=0.015,
                weights=(0.01, 0.2, 1.0, 0.5)):
    """SWD_PP.forward(x, y): w0*L2 + w1*PatchRBF + w2*PatchSWD (the 4th weight is unused,
    matching the reference module which instantiates only 3 losses)."""
    assert patch_size == rbf_patch_size, "kernels share one patch size for both patch losses"
    if key is None:
        # NOTE: the torch reference resamples projection directions every forward;
        # pass a fresh `key` per step to reproduce that behaviour.
        key = jax.random.PRNGKey(42)

    x = x.astype(jnp.float32)
    y = y.astype(jnp.float32)
    B, C, H, W = x.shape
    p = patch_size
    pad = p // 2
    K = C * p * p
    R = num_proj
    cap = _vmem_capacity_bytes()

    w_l2, w_rbf, w_swd = float(weights[0]), float(weights[1]), float(weights[2])
    l2_coef = w_l2 / float(B * C * H * W)       # mse_loss reduction='mean'
    rbf_coef = w_rbf / float(B * H * W)         # mean over patch locations and batch
    inv_two_sigma_sq = 1.0 / (2.0 * rbf_sigma * rbf_sigma)

    # --- glue: reflect pad (PatchRBFLoss(pad_image=True)) ---
    padw = ((0, 0), (0, 0), (pad, pad), (pad, pad))
    xpad = jnp.pad(x, padw, mode="reflect")     # (B, C, H+2*pad, W+2*pad)
    ypad = jnp.pad(y, padw, mode="reflect")

    # --- kernel A: per-batch w0*L2 + w1*PatchRBF partials ---
    partials = _l2_rbf_partials(xpad, ypad, H=H, W=W, p=p, K=K, l2_coef=l2_coef,
                                rbf_coef=rbf_coef, inv_two_sigma_sq=inv_two_sigma_sq, cap=cap)

    # --- kernel B: PatchSWD random projections (bf16 operands, f32 accumulation) ---
    # TODO(synk): build the stride-5 patch rows inside the kernel from the padded images
    # already resident in VMEM to remove this im2col HBM tensor entirely (needs strided
    # in-kernel gathers; kept in XLA for now).
    xs, Ns = _extract_strided_patches_nchw(x, p, stride)
    ys, _ = _extract_strided_patches_nchw(y, p, stride)
    xs = xs.astype(jnp.bfloat16)                # XLA writes the im2col tensors in bf16
    ys = ys.astype(jnp.bfloat16)
    wproj = _projection_matrix(key, C, p, R).astype(jnp.bfloat16)    # (K, R)
    projx, projy = _project_patches(xs, ys, wproj, cap=cap)

    # --- PatchSWD epilogue: sort over the combined (batch x location) axis, L1 mean ---
    # TODO(synk): torch.sort has no Mosaic lowering; the sort + L1 reduction run in XLA.
    projx = projx.reshape(B * Ns, R)
    projy = projy.reshape(B * Ns, R)
    swd = jnp.mean(jnp.abs(jnp.sort(projx, axis=0) - jnp.sort(projy, axis=0)))

    return jnp.sum(partials) + w_swd * swd


# --------------------------------------------------------------------- pure-jnp reference

def _reference_loss(x, y, key, *, num_proj=128, patch_size=11, stride=5,
                    rbf_sigma=0.015, weights=(0.01, 0.2, 1.0, 0.5)):
    """Pure-jnp reference (no Pallas) used only for the in-script numerical check."""
    x = x.astype(jnp.float32)
    y = y.astype(jnp.float32)
    B, C, H, W = x.shape
    p = patch_size
    pad = p // 2
    K = C * p * p
    # L2
    l2 = jnp.mean((x - y) ** 2)
    # PatchRBF (pad_image=True): stride-1 patches of reflect-padded images
    padw = ((0, 0), (0, 0), (pad, pad), (pad, pad))
    xp = jnp.pad(x, padw, mode="reflect")
    yp = jnp.pad(y, padw, mode="reflect")
    xpat, _ = _extract_strided_patches_nchw(xp, p, 1)
    ypat, _ = _extract_strided_patches_nchw(yp, p, 1)
    d = jnp.mean((xpat - ypat) ** 2, axis=-1)
    rbf = jnp.mean(1.0 - jnp.exp(-d / (2.0 * rbf_sigma * rbf_sigma)))
    # PatchSWD (same bf16 operands as the kernel so only accumulation order differs)
    wproj = _projection_matrix(key, C, p, num_proj).astype(jnp.bfloat16)
    xs, Ns = _extract_strided_patches_nchw(x, p, stride)
    ys, _ = _extract_strided_patches_nchw(y, p, stride)
    px = jnp.dot(xs.astype(jnp.bfloat16).reshape(B * Ns, K), wproj,
                 preferred_element_type=jnp.float32)
    py = jnp.dot(ys.astype(jnp.bfloat16).reshape(B * Ns, K), wproj,
                 preferred_element_type=jnp.float32)
    swd = jnp.mean(jnp.abs(jnp.sort(px, axis=0) - jnp.sort(py, axis=0)))
    return weights[0] * l2 + weights[1] * rbf + weights[2] * swd


if __name__ == "__main__":
    # Small shapes consistent with the module (3-channel images, spatial >= patch_size=11).
    key = jax.random.PRNGKey(0)
    kx, ky = jax.random.split(key)
    B, C, H, W = 2, 3, 16, 16
    x = jax.random.uniform(kx, (B, C, H, W), dtype=jnp.float32)
    y = jax.random.uniform(ky, (B, C, H, W), dtype=jnp.float32)

    loss = swd_pp_loss(x, y)
    jax.block_until_ready(loss)
    assert jnp.isfinite(loss), "loss is not finite"

    ref = _reference_loss(x, y, jax.random.PRNGKey(42))
    assert jnp.allclose(loss, ref, rtol=1e-2, atol=1e-3), (float(loss), float(ref))

    print("KERNEL_OK")
</pallas_src>

<mosaic_0001>
module attributes {stable_mosaic.version = 11 : i64} {
  func.func @kernel(%arg0: i32, %arg1: memref<1x3x26x26xf32, #tpu.memory_space<vmem>>, %arg2: memref<1x3x26x26xf32, #tpu.memory_space<vmem>>, %arg3: memref<1x1x1xf32, #tpu.memory_space<vmem>>, %arg4: memref<26x16xf32, #tpu.memory_space<vmem>>) attributes {dimension_semantics = [#tpu.dimension_semantics<parallel>], iteration_bounds = array<i64: 2>, scalar_prefetch = 0 : i64, scratch_operands = 1 : i64, tpu.core_type = #tpu.core_type<tc>, window_params = [{transform_indices = @transform_0, window_bounds = array<i64: 1, 3, 26, 26>}, {transform_indices = @transform_1, window_bounds = array<i64: 1, 3, 26, 26>}, {transform_indices = @transform_2, window_bounds = array<i64: 1, 1, 1>}]} {
    %cst = arith.constant 0.000000e+00 : f32
    %0 = vector.broadcast %cst : f32 to vector<1x1xf32>
    %c0 = arith.constant 0 : index
    %c0_0 = arith.constant 0 : index
    %c0_1 = arith.constant 0 : index
    %c0_2 = arith.constant 0 : index
    %1 = vector.load %arg1[%c0, %c0_0, %c0_1, %c0_2] : memref<1x3x26x26xf32, #tpu.memory_space<vmem>>, vector<1x1x26x26xf32>
    %2 = vector.shape_cast %1 : vector<1x1x26x26xf32> to vector<26x26xf32>
    %c0_3 = arith.constant 0 : index
    %c0_4 = arith.constant 0 : index
    %c0_5 = arith.constant 0 : index
    %c0_6 = arith.constant 0 : index
    %3 = vector.load %arg2[%c0_3, %c0_4, %c0_5, %c0_6] : memref<1x3x26x26xf32, #tpu.memory_space<vmem>>, vector<1x1x26x26xf32>
    %4 = vector.shape_cast %3 : vector<1x1x26x26xf32> to vector<26x26xf32>
    %5 = arith.subf %2, %4 : vector<26x26xf32>
    %6 = arith.mulf %5, %5 : vector<26x26xf32>
    %c0_7 = arith.constant 0 : index
    %c1 = arith.constant 1 : index
    %c0_8 = arith.constant 0 : index
    %c0_9 = arith.constant 0 : index
    %7 = vector.load %arg1[%c0_7, %c1, %c0_8, %c0_9] : memref<1x3x26x26xf32, #tpu.memory_space<vmem>>, vector<1x1x26x26xf32>
    %8 = vector.shape_cast %7 : vector<1x1x26x26xf32> to vector<26x26xf32>
    %c0_10 = arith.constant 0 : index
    %c1_11 = arith.constant 1 : index
    %c0_12 = arith.constant 0 : index
    %c0_13 = arith.constant 0 : index
    %9 = vector.load %arg2[%c0_10, %c1_11, %c0_12, %c0_13] : memref<1x3x26x26xf32, #tpu.memory_space<vmem>>, vector<1x1x26x26xf32>
    %10 = vector.shape_cast %9 : vector<1x1x26x26xf32> to vector<26x26xf32>
    %11 = arith.subf %8, %10 : vector<26x26xf32>
    %12 = arith.mulf %11, %11 : vector<26x26xf32>
    %13 = arith.addf %6, %12 : vector<26x26xf32>
    %c0_14 = arith.constant 0 : index
    %c2 = arith.constant 2 : index
    %c0_15 = arith.constant 0 : index
    %c0_16 = arith.constant 0 : index
    %14 = vector.load %arg1[%c0_14, %c2, %c0_15, %c0_16] : memref<1x3x26x26xf32, #tpu.memory_space<vmem>>, vector<1x1x26x26xf32>
    %15 = vector.shape_cast %14 : vector<1x1x26x26xf32> to vector<26x26xf32>
    %c0_17 = arith.constant 0 : index
    %c2_18 = arith.constant 2 : index
    %c0_19 = arith.constant 0 : index
    %c0_20 = arith.constant 0 : index
    %16 = vector.load %arg2[%c0_17, %c2_18, %c0_19, %c0_20] : memref<1x3x26x26xf32, #tpu.memory_space<vmem>>, vector<1x1x26x26xf32>
    %17 = vector.shape_cast %16 : vector<1x1x26x26xf32> to vector<26x26xf32>
    %18 = arith.subf %15, %17 : vector<26x26xf32>
    %19 = arith.mulf %18, %18 : vector<26x26xf32>
    %20 = arith.addf %13, %19 : vector<26x26xf32>
    %21 = vector.extract_strided_slice %20 {offsets = [0, 0], sizes = [26, 16], strides = [1, 1]} : vector<26x26xf32> to vector<26x16xf32>
    %22 = vector.extract_strided_slice %20 {offsets = [0, 1], sizes = [26, 16], strides = [1, 1]} : vector<26x26xf32> to vector<26x16xf32>
    %23 = arith.addf %21, %22 : vector<26x16xf32>
    %24 = vector.extract_strided_slice %20 {offsets = [0, 2], sizes = [26, 16], strides = [1, 1]} : vector<26x26xf32> to vector<26x16xf32>
    %25 = arith.addf %23, %24 : vector<26x16xf32>
    %26 = vector.extract_strided_slice %20 {offsets = [0, 3], sizes = [26, 16], strides = [1, 1]} : vector<26x26xf32> to vector<26x16xf32>
    %27 = arith.addf %25, %26 : vector<26x16xf32>
    %28 = vector.extract_strided_slice %20 {offsets = [0, 4], sizes = [26, 16], strides = [1, 1]} : vector<26x26xf32> to vector<26x16xf32>
    %29 = arith.addf %27, %28 : vector<26x16xf32>
    %30 = vector.extract_strided_slice %20 {offsets = [0, 5], sizes = [26, 16], strides = [1, 1]} : vector<26x26xf32> to vector<26x16xf32>
    %31 = arith.addf %29, %30 : vector<26x16xf32>
    %32 = vector.extract_strided_slice %20 {offsets = [0, 6], sizes = [26, 16], strides = [1, 1]} : vector<26x26xf32> to vector<26x16xf32>
    %33 = arith.addf %31, %32 : vector<26x16xf32>
    %34 = vector.extract_strided_slice %20 {offsets = [0, 7], sizes = [26, 16], strides = [1, 1]} : vector<26x26xf32> to vector<26x16xf32>
    %35 = arith.addf %33, %34 : vector<26x16xf32>
    %36 = vector.extract_strided_slice %20 {offsets = [0, 8], sizes = [26, 16], strides = [1, 1]} : vector<26x26xf32> to vector<26x16xf32>
    %37 = arith.addf %35, %36 : vector<26x16xf32>
    %38 = vector.extract_strided_slice %20 {offsets = [0, 9], sizes = [26, 16], strides = [1, 1]} : vector<26x26xf32> to vector<26x16xf32>
    %39 = arith.addf %37, %38 : vector<26x16xf32>
    %40 = vector.extract_strided_slice %20 {offsets = [0, 10], sizes = [26, 16], strides = [1, 1]} : vector<26x26xf32> to vector<26x16xf32>
    %41 = arith.addf %39, %40 : vector<26x16xf32>
    %c0_21 = arith.constant 0 : index
    %c0_22 = arith.constant 0 : index
    %42 = vector.load %arg4[%c0_21, %c0_22] : memref<26x16xf32, #tpu.memory_space<vmem>>, vector<26x16xf32>
    tpu.vector_store %arg4[%c0_21, %c0_22], %41 {strides = array<i32>} : memref<26x16xf32, #tpu.memory_space<vmem>>, vector<26x16xf32>,
    %43 = vector.extract_strided_slice %20 {offsets = [5, 5], sizes = [16, 16], strides = [1, 1]} : vector<26x26xf32> to vector<16x16xf32>
    %44 = vector.shape_cast %43 : vector<16x16xf32> to vector<1x16x16xf32>
    %cst_23 = arith.constant dense<0.000000e+00> : vector<1xf32>
    %45 = vector.multi_reduction <add>, %44, %cst_23 [1, 2] : vector<1x16x16xf32> to vector<1xf32>
    %46 = vector.shape_cast %45 : vector<1xf32> to vector<1x1x1xf32>
    %47 = vector.extract %46[0, 0, 0] : f32 from vector<1x1x1xf32>
    %48 = vector.broadcast %47 : f32 to vector<1x1xf32>
    %49 = arith.addf %0, %48 : vector<1x1xf32>
    %cst_24 = arith.constant 0.000000e+00 : f32
    %50 = vector.broadcast %cst_24 : f32 to vector<1x1xf32>
    %c0_25 = arith.constant 0 : index
    %c0_26 = arith.constant 0 : index
    %51 = vector.load %arg4[%c0_25, %c0_26] : memref<26x16xf32, #tpu.memory_space<vmem>>, vector<16x16xf32>
    %c1_27 = arith.constant 1 : index
    %c0_28 = arith.constant 0 : index
    %52 = vector.load %arg4[%c1_27, %c0_28] : memref<26x16xf32, #tpu.memory_space<vmem>>, vector<16x16xf32>
    %53 = arith.addf %51, %52 : vector<16x16xf32>
    %c2_29 = arith.constant 2 : index
    %c0_30 = arith.constant 0 : index
    %54 = vector.load %arg4[%c2_29, %c0_30] : memref<26x16xf32, #tpu.memory_space<vmem>>, vector<16x16xf32>
    %55 = arith.addf %53, %54 : vector<16x16xf32>
    %c3 = arith.constant 3 : index
    %c0_31 = arith.constant 0 : index
    %56 = vector.load %arg4[%c3, %c0_31] : memref<26x16xf32, #tpu.memory_space<vmem>>, vector<16x16xf32>
    %57 = arith.addf %55, %56 : vector<16x16xf32>
    %c4 = arith.constant 4 : index
    %c0_32 = arith.constant 0 : index
    %58 = vector.load %arg4[%c4, %c0_32] : memref<26x16xf32, #tpu.memory_space<vmem>>, vector<16x16xf32>
    %59 = arith.addf %57, %58 : vector<16x16xf32>
    %c5 = arith.constant 5 : index
    %c0_33 = arith.constant 0 : index
    %60 = vector.load %arg4[%c5, %c0_33] : memref<26x16xf32, #tpu.memory_space<vmem>>, vector<16x16xf32>
    %61 = arith.addf %59, %60 : vector<16x16xf32>
    %c6 = arith.constant 6 : index
    %c0_34 = arith.constant 0 : index
    %62 = vector.load %arg4[%c6, %c0_34] : memref<26x16xf32, #tpu.memory_space<vmem>>, vector<16x16xf32>
    %63 = arith.addf %61, %62 : vector<16x16xf32>
    %c7 = arith.constant 7 : index
    %c0_35 = arith.constant 0 : index
    %64 = vector.load %arg4[%c7, %c0_35] : memref<26x16xf32, #tpu.memory_space<vmem>>, vector<16x16xf32>
    %65 = arith.addf %63, %64 : vector<16x16xf32>
    %c8 = arith.constant 8 : index
    %c0_36 = arith.constant 0 : index
    %66 = vector.load %arg4[%c8, %c0_36] : memref<26x16xf32, #tpu.memory_space<vmem>>, vector<16x16xf32>
    %67 = arith.addf %65, %66 : vector<16x16xf32>
    %c9 = arith.constant 9 : index
    %c0_37 = arith.constant 0 : index
    %68 = vector.load %arg4[%c9, %c0_37] : memref<26x16xf32, #tpu.memory_space<vmem>>, vector<16x16xf32>
    %69 = arith.addf %67, %68 : vector<16x16xf32>
    %c10 = arith.constant 10 : index
    %c0_38 = arith.constant 0 : index
    %70 = vector.load %arg4[%c10, %c0_38] : memref<26x16xf32, #tpu.memory_space<vmem>>, vector<16x16xf32>
    %71 = arith.addf %69, %70 : vector<16x16xf32>
    %cst_39 = arith.constant 0.00275482098 : f32
    %72 = vector.broadcast %cst_39 : f32 to vector<16x16xf32>
    %73 = arith.mulf %71, %72 : vector<16x16xf32>
    %cst_40 = arith.constant 0.000000e+00 : f32
    %74 = vector.broadcast %cst_40 : f32 to vector<16x16xf32>
    %75 = arith.subf %74, %73 : vector<16x16xf32>
    %cst_41 = arith.constant 2222.22217 : f32
    %76 = vector.broadcast %cst_41 : f32 to vector<16x16xf32>
    %77 = arith.mulf %75, %76 : vector<16x16xf32>
    %78 = math.exp %77 : vector<16x16xf32>
    %cst_42 = arith.constant 1.000000e+00 : f32
    %79 = vector.broadcast %cst_42 : f32 to vector<16x16xf32>
    %80 = arith.subf %79, %78 : vector<16x16xf32>
    %81 = vector.shape_cast %80 : vector<16x16xf32> to vector<1x16x16xf32>
    %cst_43 = arith.constant dense<0.000000e+00> : vector<1xf32>
    %82 = vector.multi_reduction <add>, %81, %cst_43 [1, 2] : vector<1x16x16xf32> to vector<1xf32>
    %83 = vector.shape_cast %82 : vector<1xf32> to vector<1x1x1xf32>
    %84 = vector.extract %83[0, 0, 0] : f32 from vector<1x1x1xf32>
    %85 = vector.broadcast %84 : f32 to vector<1x1xf32>
    %86 = arith.addf %50, %85 : vector<1x1xf32>
    %cst_44 = arith.constant 6.51041682E-6 : f32
    %87 = vector.broadcast %cst_44 : f32 to vector<1x1xf32>
    %88 = arith.mulf %87, %49 : vector<1x1xf32>
    %cst_45 = arith.constant 3.906250e-04 : f32
    %89 = vector.broadcast %cst_45 : f32 to vector<1x1xf32>
    %90 = arith.mulf %89, %86 : vector<1x1xf32>
    %91 = arith.addf %88, %90 : vector<1x1xf32>
    %c0_46 = arith.constant 0 : index
    %c0_47 = arith.constant 0 : index
    %c0_48 = arith.constant 0 : index
    %92 = vector.load %arg3[%c0_46, %c0_47, %c0_48] : memref<1x1x1xf32, #tpu.memory_space<vmem>>, vector<1x1x1xf32>
    %93 = vector.shape_cast %92 : vector<1x1x1xf32> to vector<1x1xf32>
    %94 = vector.shape_cast %91 : vector<1x1xf32> to vector<1x1x1xf32>
    tpu.vector_store %arg3[%c0_46, %c0_47, %c0_48], %94 {strides = array<i32>} : memref<1x1x1xf32, #tpu.memory_space<vmem>>, vector<1x1x1xf32>,
    return
  }
  func.func @transform_0(%arg0: i32) -> (i32, i32, i32, i32) {
    %c0_i32 = arith.constant 0 : i32
    %c0_i32_0 = arith.constant 0 : i32
    %c0_i32_1 = arith.constant 0 : i32
    %c0_i32_2 = arith.constant 0 : i32
    return %arg0, %c0_i32, %c0_i32_0, %c0_i32_1 : i32, i32, i32, i32
  }
  func.func @transform_1(%arg0: i32) -> (i32, i32, i32, i32) {
    %c0_i32 = arith.constant 0 : i32
    %c0_i32_0 = arith.constant 0 : i32
    %c0_i32_1 = arith.constant 0 : i32
    %c0_i32_2 = arith.constant 0 : i32
    return %arg0, %c0_i32, %c0_i32_0, %c0_i32_1 : i32, i32, i32, i32
  }
  func.func @transform_2(%arg0: i32) -> (i32, i32, i32) {
    %c0_i32 = arith.constant 0 : i32
    %c0_i32_0 = arith.constant 0 : i32
    %c0_i32_1 = arith.constant 0 : i32
    return %arg0, %c0_i32, %c0_i32_0 : i32, i32, i32
  }
}

module attributes {stable_mosaic.version = 11 : i64} {
  func.func @_proj_kernel(%arg0: i32, %arg1: i32, %arg2: memref<1x4x363xbf16, #tpu.memory_space<vmem>>, %arg3: memref<1x4x363xbf16, #tpu.memory_space<vmem>>, %arg4: memref<363x128xbf16, #tpu.memory_space<vmem>>, %arg5: memref<1x4x128xf32, #tpu.memory_space<vmem>>, %arg6: memref<1x4x128xf32, #tpu.memory_space<vmem>>) attributes {dimension_semantics = [#tpu.dimension_semantics<parallel>, #tpu.dimension_semantics<parallel>], iteration_bounds = array<i64: 2, 1>, scalar_prefetch = 0 : i64, scratch_operands = 0 : i64, tpu.core_type = #tpu.core_type<tc>, window_params = [{transform_indices = @transform_0, window_bounds = array<i64: 1, 4, 363>}, {transform_indices = @transform_1, window_bounds = array<i64: 1, 4, 363>}, {pipeline_mode = #tpu.pipeline_mode<synchronous>, transform_indices = @transform_2, window_bounds = array<i64: 363, 128>}, {transform_indices = @transform_3, window_bounds = array<i64: 1, 4, 128>}, {transform_indices = @transform_4, window_bounds = array<i64: 1, 4, 128>}]} {
    %c0 = arith.constant 0 : index
    %c0_0 = arith.constant 0 : index
    %0 = vector.load %arg4[%c0, %c0_0] : memref<363x128xbf16, #tpu.memory_space<vmem>>, vector<363x128xbf16>
    %c0_1 = arith.constant 0 : index
    %c0_2 = arith.constant 0 : index
    %c0_3 = arith.constant 0 : index
    %1 = vector.load %arg2[%c0_1, %c0_2, %c0_3] : memref<1x4x363xbf16, #tpu.memory_space<vmem>>, vector<1x4x363xbf16>
    %2 = vector.shape_cast %1 : vector<1x4x363xbf16> to vector<4x363xbf16>
    %cst = arith.constant dense<0.000000e+00> : vector<4x128xf32>
    %3 = tpu.matmul %2, %0, %cst {dimension_numbers = #tpu.dot_dimension_numbers<[1], [0], [0], [1], [0, 0, 1, 1], [], []>} : vector<4x363xbf16>, vector<363x128xbf16>, vector<4x128xf32> -> vector<4x128xf32>
    %c0_4 = arith.constant 0 : index
    %c0_5 = arith.constant 0 : index
    %c0_6 = arith.constant 0 : index
    %4 = vector.load %arg5[%c0_4, %c0_5, %c0_6] : memref<1x4x128xf32, #tpu.memory_space<vmem>>, vector<1x4x128xf32>
    %5 = vector.shape_cast %4 : vector<1x4x128xf32> to vector<4x128xf32>
    %6 = vector.shape_cast %3 : vector<4x128xf32> to vector<1x4x128xf32>
    tpu.vector_store %arg5[%c0_4, %c0_5, %c0_6], %6 {strides = array<i32>} : memref<1x4x128xf32, #tpu.memory_space<vmem>>, vector<1x4x128xf32>,
    %c0_7 = arith.constant 0 : index
    %c0_8 = arith.constant 0 : index
    %c0_9 = arith.constant 0 : index
    %7 = vector.load %arg3[%c0_7, %c0_8, %c0_9] : memref<1x4x363xbf16, #tpu.memory_space<vmem>>, vector<1x4x363xbf16>
    %8 = vector.shape_cast %7 : vector<1x4x363xbf16> to vector<4x363xbf16>
    %cst_10 = arith.constant dense<0.000000e+00> : vector<4x128xf32>
    %9 = tpu.matmul %8, %0, %cst_10 {dimension_numbers = #tpu.dot_dimension_numbers<[1], [0], [0], [1], [0, 0, 1, 1], [], []>} : vector<4x363xbf16>, vector<363x128xbf16>, vector<4x128xf32> -> vector<4x128xf32>
    %c0_11 = arith.constant 0 : index
    %c0_12 = arith.constant 0 : index
    %c0_13 = arith.constant 0 : index
    %10 = vector.load %arg6[%c0_11, %c0_12, %c0_13] : memref<1x4x128xf32, #tpu.memory_space<vmem>>, vector<1x4x128xf32>
    %11 = vector.shape_cast %10 : vector<1x4x128xf32> to vector<4x128xf32>
    %12 = vector.shape_cast %9 : vector<4x128xf32> to vector<1x4x128xf32>
    tpu.vector_store %arg6[%c0_11, %c0_12, %c0_13], %12 {strides = array<i32>} : memref<1x4x128xf32, #tpu.memory_space<vmem>>, vector<1x4x128xf32>,
    return
  }
  func.func @transform_0(%arg0: i32, %arg1: i32) -> (i32, i32, i32) {
    %c0_i32 = arith.constant 0 : i32
    %c0_i32_0 = arith.constant 0 : i32
    return %arg0, %arg1, %c0_i32 : i32, i32, i32
  }
  func.func @transform_1(%arg0: i32, %arg1: i32) -> (i32, i32, i32) {
    %c0_i32 = arith.constant 0 : i32
    %c0_i32_0 = arith.constant 0 : i32
    return %arg0, %arg1, %c0_i32 : i32, i32, i32
  }
  func.func @transform_2(%arg0: i32, %arg1: i32) -> (i32, i32) {
    %c0_i32 = arith.constant 0 : i32
    %c0_i32_0 = arith.constant 0 : i32
    %c0_i32_1 = arith.constant 0 : i32
    return %c0_i32, %c0_i32_0 : i32, i32
  }
  func.func @transform_3(%arg0: i32, %arg1: i32) -> (i32, i32, i32) {
    %c0_i32 = arith.constant 0 : i32
    %c0_i32_0 = arith.constant 0 : i32
    return %arg0, %arg1, %c0_i32 : i32, i32, i32
  }
  func.func @transform_4(%arg0: i32, %arg1: i32) -> (i32, i32, i32) {
    %c0_i32 = arith.constant 0 : i32
    %c0_i32_0 = arith.constant 0 : i32
    return %arg0, %arg1, %c0_i32 : i32, i32, i32
  }
}

</mosaic_0001>

<bundles_post_ra>
// kernel: swd_pp_loss.2
= control target key start
LH: loop header
LB: loop body
LE: loop exit
PB: predicated region body
PF: predicated region fallthrough
CT: control target
= control target key end

     0   :  { %s630_s9 = smov 0   ;;  %s774_s0 = inlined_call_operand.vmem [shape: f32[2,3,26,26], index: 0, kind: input, shape index: {}]   ;;  %s775_s1 = inlined_call_operand.vmem [shape: f32[2,3,26,26], index: 1, kind: input, shape index: {}]   ;;  %s776_s2 = inlined_call_operand.vmem [shape: f32[2,1,1], index: 2, kind: output, shape index: {}]  }
   0x1 LB: > { %s545_s10 = sadd.s32 4294967295, %s603_s9   ;;  %p549_p0 = scmp.ge.s32.totalorder %s603_s9, 1  ;;  %s603_s9 = sphi %s630_s9, %s12_s9  }
   0x2   : > { %p122_p1 = scmp.lt.s32.totalorder %s603_s9, 3 }
   0x4   : > { %p123_p2 = pnand %p549_p0, %p122_p1 }
   0x5   : > { %p147_p3 = scmp.lt.s32.totalorder (!%p123_p2), %s545_s10, 1  ;;  %s605_s18 = smov (!%p123_p2), 127   ;;  %vm390_vm0 = vcmask (!%p123_p2), 1042432   ;;  %vm384_vm1 = vcmask (!%p123_p2), 130048   ;;  %vm388_vm2 = vcmask (!%p123_p2), 123904   ;;  %vm484_vm3 = vcmask (!%p123_p2), 0  }
   0x6   : > { %126 = sbr.rel (%p123_p2) target bundleno = 470 (0x1d6), region = 28  ;;  %s606_s19 = smov (!%p123_p2), 126  }
   0x7   : > { %s607_s20 = smov (!%p123_p2), 125   ;;  %s608_s21 = smov (!%p123_p2), 124  }
   0x8   : > { %s609_s22 = smov (!%p123_p2), 123   ;;  %s610_s23 = smov (!%p123_p2), 122  }
   0x9   : > { %s611_s24 = smov (!%p123_p2), 121   ;;  %s612_s25 = smov (!%p123_p2), 120  }
   0xa   : > { %s613_s26 = smov (!%p123_p2), 119   ;;  %s614_s27 = smov (!%p123_p2), 118  }
   0xd   : > { %s778_s10 = smov (!%p147_p3, %s545_s10), 1 }
   0xe   : > { %s570_s11 = smul.u32 96, %s778_s10  ;;  %s159_s4 = scalar_lea.vmem %s776_s2, %s778_s10 }
  0x10   : > { %s644_s14 = scalar_lea.vmem %s774_s0, %s570_s11  ;;  %s649_s17 = scalar_lea.vmem %s775_s1, %s570_s11 }
  0x11   : > { %v162_v0 = vld [vmem:[%s644_s14 + $0x10] sm:$0xff]  ;;  %v160_v9 = vld [vmem:[%s644_s14] sm:$0xff]  ;;  %v161_v21 = vld [vmem:[%s644_s14 + $0x8] sm:$0xff] }
  0x12   : > { %v166_v1 = vld [vmem:[%s649_s17 + $0x10] sm:$0xff]  ;;  %v164_v10 = vld [vmem:[%s649_s17] sm:$0xff]  ;;  %v165_v22 = vld [vmem:[%s649_s17 + $0x8] sm:$0xff] }
  0x13   : > { %v554_v2 = vld [vmem:[%s644_s14 + $0x30] sm:$0xff]  ;;  %v170_v3 = vsub.f32 %v162_v0, %v166_v1  ;;  %v552_v11 = vld [vmem:[%s644_s14 + $0x20] sm:$0xff]  ;;  %v168_v13 = vsub.f32 %v160_v9, %v164_v10  ;;  %v553_v23 = vld [vmem:[%s644_s14 + $0x28] sm:$0xff]  ;;  %v169_v25 = vsub.f32 %v161_v21, %v165_v22 }
  0x14   : > { %v558_v4 = vld [vmem:[%s649_s17 + $0x30] sm:$0xff]  ;;  %v556_v14 = vld [vmem:[%s649_s17 + $0x20] sm:$0xff]  ;;  %v557_v26 = vld [vmem:[%s649_s17 + $0x28] sm:$0xff] }
  0x15   : > { %v562_v5 = vld [vmem:[%s644_s14 + $0x50] sm:$0xff]  ;;  %v188_v7 = vsub.f32 %v554_v2, %v558_v4  ;;  %v174_v12 = vmul.f32 %v170_v3, %v170_v3  ;;  %v560_v15 = vld [vmem:[%s644_s14 + $0x40] sm:$0xff]  ;;  %v186_v19 = vsub.f32 %v552_v11, %v556_v14  ;;  %v172_v24 = vmul.f32 %v168_v13, %v168_v13  ;;  %v561_v27 = vld [vmem:[%s644_s14 + $0x48] sm:$0xff] }
  0x16   : > { %v566_v6 = vld [vmem:[%s649_s17 + $0x50] sm:$0xff]  ;;  %v564_v16 = vld [vmem:[%s649_s17 + $0x40] sm:$0xff]  ;;  %v565_v28 = vld [vmem:[%s649_s17 + $0x48] sm:$0xff]  ;;  %v187_v32 = vsub.f32 %v553_v23, %v557_v26  ;;  %v173_v33 = vmul.f32 %v169_v25, %v169_v25 }
  0x17   : > { %v210_v8 = vsub.f32 %v562_v5, %v566_v6  ;;  %v192_v17 = vmul.f32 %v188_v7, %v188_v7  ;;  %v208_v20 = vsub.f32 %v560_v15, %v564_v16  ;;  %v190_v30 = vmul.f32 %v186_v19, %v186_v19  ;;  %v163_v42 = vld [vmem:[%s644_s14 + $0x18] sm:$0x3] }
  0x18   : > { %v209_v34 = vsub.f32 %v561_v27, %v565_v28  ;;  %v191_v37 = vmul.f32 %v187_v32, %v187_v32  ;;  %v167_v43 = vld [vmem:[%s649_s17 + $0x18] sm:$0x3] }
  0x19   : > { %v214_v18 = vmul.f32 %v210_v8, %v210_v8  ;;  %v196_v29 = vadd.f32 %v192_v17, %v174_v12  ;;  %v212_v31 = vmul.f32 %v208_v20, %v208_v20  ;;  %v194_v36 = vadd.f32 %v190_v30, %v172_v24  ;;  %v555_v44 = vld [vmem:[%s644_s14 + $0x38] sm:$0x3] }
  0x1a   : > { %v213_v38 = vmul.f32 %v209_v34, %v209_v34  ;;  %v195_v40 = vadd.f32 %v191_v37, %v173_v33  ;;  %v559_v45 = vld [vmem:[%s649_s17 + $0x38] sm:$0x3]  ;;  %v171_v46 = vsub.f32 %v163_v42, %v167_v43 }
  0x1b   : > { %v669_v35 = vadd.f32 %v214_v18, %v196_v29  ;;  %v673_v39 = vadd.f32 %v212_v31, %v194_v36  ;;  %v189_v47 = vsub.f32 %v555_v44, %v559_v45  ;;  %v563_v48 = vld [vmem:[%s644_s14 + $0x58] sm:$0x3] }
  0x1c   : > { %v677_v41 = vadd.f32 %v213_v38, %v195_v40  ;;  %v567_v49 = vld [vmem:[%s649_s17 + $0x58] sm:$0x3]  ;;  %v175_v50 = vmul.f32 %v171_v46, %v171_v46 }
  0x1d   : > { %228 = vrot.lane.b32.xlu1 %v669_v35, %s605_s18  ;;  %224 = vrot.lane.b32.xlu0 %v673_v39, %s605_s18  ;;  %v193_v51 = vmul.f32 %v189_v47, %v189_v47  ;;  %v211_v52 = vsub.f32 %v563_v48, %v567_v49  ;;  %v394_v57 = vrot.slane %v669_v35, 5  ;;  %v391_v58 = vrot.slane %v673_v39, 5 }
  0x1e   : > { %v392_v56 = vrot.slane %v677_v41, 5 }
  0x1f   : > { %v197_v53 = vadd.f32 %v193_v51, %v175_v50  ;;  %v215_v54 = vmul.f32 %v211_v52, %v211_v52 }
  0x20   : > { %v395_v59 = vsel %vm390_vm0, %v392_v56, %v394_v57  ;;  %v393_v60 = vsel %vm390_vm0, %v391_v58, %v392_v56 }
  0x21   : > { %240 = vrot.lane.b32.xlu1 %v673_v39, %s606_s19  ;;  %226 = vrot.lane.b32.xlu0 %v677_v41, %s605_s18  ;;  %v726_v55 = vadd.f32 %v215_v54, %v197_v53 }
  0x25   : > { %244 = vrot.lane.b32.xlu1 %v669_v35, %s606_s19  ;;  %242 = vrot.lane.b32.xlu0 %v677_v41, %s606_s19 }
  0x29   : > { %258 = vrot.lane.b32.xlu1 %v677_v41, %s607_s20  ;;  %256 = vrot.lane.b32.xlu0 %v673_v39, %s607_s20 }
  0x2d   : > { %272 = vrot.lane.b32.xlu1 %v673_v39, %s608_s21  ;;  %260 = vrot.lane.b32.xlu0 %v669_v35, %s607_s20 }
  0x31   : > { %276 = vrot.lane.b32.xlu1 %v669_v35, %s608_s21  ;;  %274 = vrot.lane.b32.xlu0 %v677_v41, %s608_s21 }
  0x35   : > { %290 = vrot.lane.b32.xlu1 %v677_v41, %s609_s22  ;;  %288 = vrot.lane.b32.xlu0 %v673_v39, %s609_s22 }
  0x39   : > { %304 = vrot.lane.b32.xlu1 %v673_v39, %s610_s23  ;;  %292 = vrot.lane.b32.xlu0 %v669_v35, %s609_s22 }
  0x3d   : > { %308 = vrot.lane.b32.xlu1 %v669_v35, %s610_s23  ;;  %306 = vrot.lane.b32.xlu0 %v677_v41, %s610_s23 }
  0x41   : > { %322 = vrot.lane.b32.xlu1 %v677_v41, %s611_s24  ;;  %320 = vrot.lane.b32.xlu0 %v673_v39, %s611_s24 }
  0x45   : > { %336 = vrot.lane.b32.xlu1 %v673_v39, %s612_s25  ;;  %324 = vrot.lane.b32.xlu0 %v669_v35, %s611_s24 }
  0x49   : > { %340 = vrot.lane.b32.xlu1 %v669_v35, %s612_s25  ;;  %338 = vrot.lane.b32.xlu0 %v677_v41, %s612_s25 }
  0x4d   : > { %352 = vrot.lane.b32.xlu1 %v673_v39, %s613_s26  ;;  %230 = vrot.lane.b32.xlu0 %v726_v55, %s605_s18 }
  0x51   : > { %356 = vrot.lane.b32.xlu1 %v669_v35, %s613_s26  ;;  %354 = vrot.lane.b32.xlu0 %v677_v41, %s613_s26 }
  0x55   : > { %368 = vrot.lane.b32.xlu1 %v673_v39, %s614_s27  ;;  %246 = vrot.lane.b32.xlu0 %v726_v55, %s606_s19 }
  0x59   : > { %372 = vrot.lane.b32.xlu1 %v669_v35, %s614_s27  ;;  %370 = vrot.lane.b32.xlu0 %v677_v41, %s614_s27 }
  0x5d   : > { %278 = vrot.lane.b32.xlu1 %v726_v55, %s608_s21  ;;  %262 = vrot.lane.b32.xlu0 %v726_v55, %s607_s20 }
  0x61   : > { %310 = vrot.lane.b32.xlu1 %v726_v55, %s610_s23  ;;  %294 = vrot.lane.b32.xlu0 %v726_v55, %s609_s22 }
  0x65   : > { %342 = vrot.lane.b32.xlu1 %v726_v55, %s612_s25  ;;  %326 = vrot.lane.b32.xlu0 %v726_v55, %s611_s24 }
  0x69   : > { %374 = vrot.lane.b32.xlu1 %v726_v55, %s614_s27  ;;  %358 = vrot.lane.b32.xlu0 %v726_v55, %s613_s26 }
  0x6d   : > { %398 = vrot.lane.b32.xlu1 %v395_v59, %s609_s22  ;;  %396 = vrot.lane.b32.xlu0 %v393_v60, %s609_s22 }
  0x8f   : > { %v229_v61 = vpop.permute.xlu1 %228  ;;  %v225_v62 = vpop.permute.xlu0 %224 }
  0x90   : > { %v236_v17 = vadd.f32 %v225_v62, %v673_v39  ;;  %v238_v21 = vadd.f32 %v229_v61, %v669_v35 }
  0x93   : > { %v241_v63 = vpop.permute.xlu1 %240  ;;  %v227_v0 = vpop.permute.xlu0 %226 }
  0x94   : > { %v252_v19 = vadd.f32 %v241_v63, %v236_v17  ;;  %v237_v24 = vadd.f32 %v227_v0, %v677_v41 }
  0x97   : > { %v245_v1 = vpop.permute.xlu1 %244  ;;  %v243_v2 = vpop.permute.xlu0 %242 }
  0x98   : > { %v254_v25 = vadd.f32 %v245_v1, %v238_v21  ;;  %v253_v28 = vadd.f32 %v243_v2, %v237_v24 }
  0x9b   : > { %v259_v3 = vpop.permute.xlu1 %258  ;;  %v257_v4 = vpop.permute.xlu0 %256 }
  0x9c   : > { %v268_v22 = vadd.f32 %v257_v4, %v252_v19  ;;  %v269_v32 = vadd.f32 %v259_v3, %v253_v28 }
  0x9f   : > { %v273_v5 = vpop.permute.xlu1 %272  ;;  %v261_v6 = vpop.permute.xlu0 %260 }
  0xa0   : > { %v284_v26 = vadd.f32 %v273_v5, %v268_v22  ;;  %v270_v29 = vadd.f32 %v261_v6, %v254_v25 }
  0xa3   : > { %v277_v7 = vpop.permute.xlu1 %276  ;;  %v275_v8 = vpop.permute.xlu0 %274 }
  0xa4   : > { %v286_v33 = vadd.f32 %v277_v7, %v270_v29  ;;  %v285_v37 = vadd.f32 %v275_v8, %v269_v32 }
  0xa7   : > { %v291_v9 = vpop.permute.xlu1 %290  ;;  %v289_v10 = vpop.permute.xlu0 %288 }
  0xa8   : > { %v300_v30 = vadd.f32 %v289_v10, %v284_v26  ;;  %v301_v35 = vadd.f32 %v291_v9, %v285_v37 }
  0xab   : > { %v305_v11 = vpop.permute.xlu1 %304  ;;  %v293_v12 = vpop.permute.xlu0 %292 }
  0xac   : > { %v316_v34 = vadd.f32 %v305_v11, %v300_v30  ;;  %v302_v38 = vadd.f32 %v293_v12, %v286_v33 }
  0xaf   : > { %v309_v13 = vpop.permute.xlu1 %308  ;;  %v307_v14 = vpop.permute.xlu0 %306 }
  0xb0   : > { %v318_v42 = vadd.f32 %v309_v13, %v302_v38  ;;  %v317_v41 = vadd.f32 %v307_v14, %v301_v35 }
  0xb3   : > { %v323_v15 = vpop.permute.xlu1 %322  ;;  %v321_v16 = vpop.permute.xlu0 %320 }
  0xb4   : > { %v332_v39 = vadd.f32 %v321_v16, %v316_v34  ;;  %v333_v48 = vadd.f32 %v323_v15, %v317_v41 }
  0xb7   : > { %v337_v18 = vpop.permute.xlu1 %336  ;;  %v325_v20 = vpop.permute.xlu0 %324 }
  0xb8   : > { %v348_v43 = vadd.f32 %v337_v18, %v332_v39  ;;  %v334_v45 = vadd.f32 %v325_v20, %v318_v42 }
  0xbb   : > { %v341_v23 = vpop.permute.xlu1 %340  ;;  %v339_v27 = vpop.permute.xlu0 %338 }
  0xbc   : > { %v350_v49 = vadd.f32 %v341_v23, %v334_v45  ;;  %v349_v52 = vadd.f32 %v339_v27, %v333_v48 }
  0xbf   : > { %v353_v31 = vpop.permute.xlu1 %352  ;;  %v231_v36 = vpop.permute.xlu0 %230 }
  0xc0   : > { %v364_v46 = vadd.f32 %v353_v31, %v348_v43  ;;  %v239_v59 = vadd.f32 %v231_v36, %v726_v55 }
  0xc3   : > { %v357_v40 = vpop.permute.xlu1 %356  ;;  %v355_v44 = vpop.permute.xlu0 %354 }
  0xc4   : > { %v366_v53 = vadd.f32 %v357_v40, %v350_v49  ;;  %v365_v56 = vadd.f32 %v355_v44, %v349_v52 }
  0xc7   : > { %v369_v47 = vpop.permute.xlu1 %368  ;;  %v247_v51 = vpop.permute.xlu0 %246 }
  0xc8   : > { %v380_v50 = vadd.f32 %v369_v47, %v364_v46  ;;  %v255_v62 = vadd.f32 %v247_v51, %v239_v59 }
  0xca   : > { %385 = vst.msk [vmem:[#allocation2] sm:$0xff] %vm384_vm1, %v380_v50 }
  0xcb   : > { %v373_v54 = vpop.permute.xlu1 %372  ;;  %v371_v58 = vpop.permute.xlu0 %370 }
  0xcc   : > { %v382_v57 = vadd.f32 %v373_v54, %v366_v53  ;;  %v381_v60 = vadd.f32 %v371_v58, %v365_v56 }
  0xce   : > { %387 = vst.msk [vmem:[#allocation2 + $0x10] sm:$0xff] %vm384_vm1, %v382_v57  ;;  %386 = vst.msk [vmem:[#allocation2 + $0x8] sm:$0xff] %vm384_vm1, %v381_v60 }
  0xcf   : > { %v279_v61 = vpop.permute.xlu1 %278  ;;  %v263_v63 = vpop.permute.xlu0 %262 }
  0xd0   : > { %v271_v0 = vadd.f32 %v263_v63, %v255_v62 }
  0xd1   : > { %v416_v5 = vld [vmem:[#allocation2] sm:$0xff] }
  0xd2   : > { %v287_v2 = vadd.f32 %v279_v61, %v271_v0 }
  0xd3   : > { %v311_v1 = vpop.permute.xlu1 %310  ;;  %v295_v3 = vpop.permute.xlu0 %294 }
  0xd4   : > { %v303_v4 = vadd.f32 %v295_v3, %v287_v2 }
  0xd5   : > { %v417_v7 = vld [vmem:[#allocation2 + $0x8] sm:$0xff]  ;;  %v446_v49 = vld [vmem:[#allocation2 + $0x10] sm:$0xff] }
  0xd6   : > { %v418_v8 = vld [vmem:[#allocation2 + $0x1] sm:$0xff]  ;;  %v419_v9 = vld [vmem:[#allocation2 + $0x9] sm:$0xff]  ;;  %v319_v10 = vadd.f32 %v311_v1, %v303_v4 }
  0xd7   : > { %v343_v6 = vpop.permute.xlu1 %342  ;;  %v420_v55 = vadd.f32 %v418_v8, %v416_v5  ;;  %v421_v11 = vadd.f32 %v419_v9, %v417_v7  ;;  %v327_v12 = vpop.permute.xlu0 %326  ;;  %v422_v13 = vld [vmem:[#allocation2 + $0x2] sm:$0xff]  ;;  %v423_v14 = vld [vmem:[#allocation2 + $0xa] sm:$0xff] }
  0xd8   : > { %v335_v15 = vadd.f32 %v327_v12, %v319_v10  ;;  %v426_v19 = vld [vmem:[#allocation2 + $0x3] sm:$0xff]  ;;  %v427_v20 = vld [vmem:[#allocation2 + $0xb] sm:$0xff] }
  0xd9   : > { %v424_v16 = vadd.f32 %v422_v13, %v420_v55  ;;  %v425_v17 = vadd.f32 %v423_v14, %v421_v11  ;;  %v430_v25 = vld [vmem:[#allocation2 + $0x4] sm:$0xff]  ;;  %v431_v26 = vld [vmem:[#allocation2 + $0xc] sm:$0xff] }
  0xda   : > { %v351_v21 = vadd.f32 %v343_v6, %v335_v15  ;;  %v434_v31 = vld [vmem:[#allocation2 + $0x5] sm:$0xff]  ;;  %v435_v32 = vld [vmem:[#allocation2 + $0xd] sm:$0xff] }
  0xdb   : > { %v375_v18 = vpop.permute.xlu1 %374  ;;  %v428_v22 = vadd.f32 %v426_v19, %v424_v16  ;;  %v429_v23 = vadd.f32 %v427_v20, %v425_v17  ;;  %v359_v24 = vpop.permute.xlu0 %358  ;;  %v438_v39 = vld [vmem:[#allocation2 + $0x6] sm:$0xff]  ;;  %v439_v40 = vld [vmem:[#allocation2 + $0xe] sm:$0xff] }
  0xdc   : > { %v367_v27 = vadd.f32 %v359_v24, %v351_v21  ;;  %v442_v41 = vld [vmem:[#allocation2 + $0x7] sm:$0xff]  ;;  %v443_v45 = vld [vmem:[#allocation2 + $0xf] sm:$0xff] }
  0xdd   : > { %v432_v28 = vadd.f32 %v430_v25, %v428_v22  ;;  %v433_v29 = vadd.f32 %v431_v26, %v429_v23 }
  0xde   : > { %v383_v33 = vadd.f32 %v375_v18, %v367_v27 }
  0xdf   : > { %v399_v30 = vpop.permute.xlu1 %398  ;;  %v436_v36 = vadd.f32 %v434_v31, %v432_v28  ;;  %v437_v37 = vadd.f32 %v435_v32, %v433_v29  ;;  %v397_v38 = vpop.permute.xlu0 %396 }
  0xe0   : > { %v403_v34 = vsel %vm384_vm1, %v399_v30, 0.0  ;;  %389 = vst.msk [vmem:[#allocation2 + $0x18] sm:$0x3] %vm388_vm2, %v383_v33  ;;  %v402_v35 = vsel %vm384_vm1, %v397_v38, 0.0 }
  0xe1   : > { %v440_v42 = vadd.f32 %v438_v39, %v436_v36  ;;  %v441_v43 = vadd.f32 %v439_v40, %v437_v37  ;;  %v404_v44 = vadd.f32 %v403_v34, %v402_v35 }
  0xe3   : > { %v444_v46 = vadd.f32 %v442_v41, %v440_v42  ;;  %v445_v47 = vadd.f32 %v443_v45, %v441_v43  ;;  %405 = vadd.xlane.f32.xlu0 %v404_v44 }
  0xe5   : > { %v447_v48 = vadd.f32 %v444_v46, %v417_v7  ;;  %v448_v50 = vadd.f32 %v446_v49, %v445_v47 }
  0xe7   : > { %v450_v51 = vadd.f32 %v447_v48, %v419_v9  ;;  %v449_v52 = vld [vmem:[#allocation2 + $0x11] sm:$0xff] }
  0xe8   : > { %v451_v53 = vadd.f32 %v449_v52, %v448_v50  ;;  %v452_v56 = vld [vmem:[#allocation2 + $0x12] sm:$0xff] }
  0xe9   : > { %v453_v54 = vadd.f32 %v450_v51, %v423_v14 }
  0xea   : > { %v454_v57 = vadd.f32 %v452_v56, %v451_v53 }
  0xeb   : > { %v455_v58 = vmul.f32 0.002754821, %v453_v54 }
  0xec   : > { %v456_v59 = vmul.f32 0.002754821, %v454_v57 }
  0xed   : > { %v457_v60 = vsub.f32 0.0, %v455_v58 }
  0xee   : > { %v458_v61 = vsub.f32 0.0, %v456_v59 }
  0xef   : > { %v459_v62 = vmul.f32 2222.2222, %v457_v60 }
  0xf0   : > { %v460_v63 = vmul.f32 2222.2222, %v458_v61 }
  0xf1   : > { %v461_v0 = vmul.f32 1.442695, %v459_v62 }
  0xf2   : > { %v463_v1 = vmul.f32 1.442695, %v460_v63 }
  0xf3   : > { %593 = vpow2.f32 %v461_v0 }
  0xf4   : > { %595 = vpow2.f32 %v463_v1 }
  0xfd   : > { %v594_v2 = vpop.eup %593 }
  0xfe   : > { %v465_v3 = vsub.f32 1.0, %v594_v2  ;;  %v596_v4 = vpop.eup %595 }
  0xff   : > { %v466_v5 = vsub.f32 1.0, %v596_v4 }
 0x100   : > { %v467_v6 = vsel %vm384_vm1, %v465_v3, 0.0 }
 0x101   : > { %v468_v7 = vsel %vm384_vm1, %v466_v5, 0.0 }
 0x102   : > { %v469_v8 = vadd.f32 %v468_v7, %v467_v6 }
 0x104   : > { %470 = vadd.xlane.f32.xlu1 %v469_v8 }
 0x170   : > { %v406_v9 = vpop.xlane.xlu0 %405 }
 0x171   : > { %v407_v10 = vrot.slane %v406_v9, 4 }
 0x173   : > { %v408_v55 = vadd.f32 %v407_v10, %v406_v9 }
 0x175   : > { %v409_v11 = vrot.slane %v408_v55, 2 }
 0x177   : > { %v410_v12 = vadd.f32 %v409_v11, %v408_v55 }
 0x179   : > { %v411_v13 = vrot.slane %v410_v12, 1 }
 0x17b   : > { %v412_v14 = vadd.f32 %v411_v13, %v410_v12 }
 0x17d   : > { %571 = vpush %v412_v14 }
 0x191   : > { %v471_v15 = vpop.xlane.xlu1 %470 }
 0x192   : > { %v472_v16 = vrot.slane %v471_v15, 4 }
 0x194   : > { %v473_v17 = vadd.f32 %v472_v16, %v471_v15 }
 0x196   : > { %v474_v18 = vrot.slane %v473_v17, 2 }
 0x198   : > { %v475_v19 = vadd.f32 %v474_v18, %v473_v17 }
 0x19a   : > { %v476_v20 = vrot.slane %v475_v19, 1 }
 0x19c   : > { %v477_v21 = vadd.f32 %v476_v20, %v475_v19 }
 0x19e   : > { %573 = vpush %v477_v21 }
 0x1ae   : > { %s572_s28 = spop %571 }
 0x1af   : > { %v414_v22 = vstv %s572_s28 }
 0x1b0   : > { %v481_v24 = vmul.f32 6.510417e-06, %v414_v22 }
 0x1cf   : > { %s574_s29 = spop %573 }
 0x1d0   : > { %v479_v23 = vstv %s574_s29 }
 0x1d1   : > { %v482_v25 = vmul.f32 0.000390625, %v479_v23 }
 0x1d3   : > { %v483_v26 = vadd.f32 %v482_v25, %v481_v24 }
 0x1d5   : > { %485 = vst.msk [vmem:[%s159_s4] sm:$0x1] %vm484_vm3, %v483_v26 }
 0x1d6 PF: > { %s12_s9 = sadd.s32 1, %s603_s9  }
 0x1d7   : > { %p9_p4 = scmp.ge.s32.totalorder %s12_s9, 4  }
 0x1d9   :  { %11 = sbr.rel (!%p9_p4) target bundleno = 1 (0x1), region = 65 }

// kernel: swd_pp_loss.3
= control target key start
LH: loop header
LB: loop body
LE: loop exit
PB: predicated region body
PF: predicated region fallthrough
CT: control target
= control target key end

     0   :  { %s1064_s15 = smov 0   ;;  %s1066_s16 = smov 0   ;;  %s1268_s0 = inlined_call_operand.vmem [shape: bf16[2,4,363], index: 0, kind: input, shape index: {}]   ;;  %s1269_s1 = inlined_call_operand.vmem [shape: bf16[2,4,363], index: 1, kind: input, shape index: {}]   ;;  %s1270_s2 = inlined_call_operand.vmem [shape: bf16[363,128], index: 2, kind: input, shape index: {}]   ;;  %s1271_s3 = inlined_call_operand.vmem [shape: f32[2,4,128], index: 3, kind: output, shape index: {0}]   ;;  %s1272_s4 = inlined_call_operand.vmem [shape: f32[2,4,128], index: 4, kind: output, shape index: {1}]  }
   0x1   :  { %s1068_s17 = smov 0  }
   0x2 LB: > { %s27_s18 = sadd.s32 1, %s1029_s16  ;;  %p829_p0 = scmp.ge.s32.totalorder %s1033_s17, 1  ;;  %s1033_s17 = sphi %s1068_s17, %s15_s17   ;;  %s1029_s16 = sphi %s1066_s16, %s1274_s16   ;;  %s1025_s15 = sphi %s1064_s15, %s1273_s15  }
   0x3   : > { %p29_p1 = scmp.ge.s32.totalorder %s27_s18, 2  ;;  %p203_p2 = scmp.lt.s32.totalorder %s1033_s17, 3 }
   0x5   : > { %s1276_s18 = smov (%p29_p1, %s27_s18), 0  ;;  %p204_p3 = pnand %p829_p0, %p203_p2 }
   0x6   : > { %v1087_v0 = vld [vmem:[%s1270_s2 + $0x40] sm:$0xff] (!%p204_p3)   ;;  %v1035_v1 = vmov (!%p204_p3), 0.0   ;;  %v1105_v4 = vld [vmem:[%s1270_s2 + $0x48] sm:$0xff] (!%p204_p3)   ;;  %v1123_v7 = vld [vmem:[%s1270_s2 + $0x50] sm:$0xff] (!%p204_p3)   ;;  %vm1036_vm0 = vmmov (!%p204_p3), 0   ;;  %p251_p4 = scmp.lt.s32.totalorder (!%p204_p3), %s1025_s15, 1  ;;  %v336_v21 = vlaneseq (!%p204_p3) }
   0x7   : > { %207 = sbr.rel (%p204_p3) target bundleno = 285 (0x11d), region = 32  ;;  %921 = vmatprep.subr.bf16.mxu1 (!%p204_p3), %v1035_v1  ;;  %v1093_v2 = vld [vmem:[%s1270_s2 + $0x80] sm:$0xff] (!%p204_p3)   ;;  %861 = vmatprep.subr.bf16.mxu0 (!%p204_p3), %v1087_v0  ;;  %v1112_v5 = vld [vmem:[%s1270_s2 + $0x88] sm:$0xff] (!%p204_p3)   ;;  %v1129_v8 = vld [vmem:[%s1270_s2 + $0x90] sm:$0xff] (!%p204_p3)   ;;  %vm491_vm1 = vcmask (!%p204_p3), 1044480   ;;  %vm492_vm2 = vcmask (!%p204_p3), 1045504  }
   0x8   : > { %v1099_v3 = vld [vmem:[%s1270_s2] sm:$0xff] (!%p204_p3)   ;;  %922 = vmatpush3.bf16.msra.mxu1 (!%p204_p3), %v1093_v2  ;;  %v1118_v6 = vld [vmem:[%s1270_s2 + $0x8] sm:$0xff] (!%p204_p3)   ;;  %935 = vmatprep.mubr.msk.bf16.mxu1 (!%p204_p3), %vm1036_vm0, %v1035_v1  ;;  %v1139_v9 = vld [vmem:[%s1270_s2 + $0x10] sm:$0xff] (!%p204_p3)   ;;  %v1037_v18 = vmov (!%p204_p3), 65535   ;;  %v1038_v26 = vmov (!%p204_p3), 1983009808  }
   0x9   : > { %862 = vmatpush3.bf16.msra.mxu0 (!%p204_p3), %v1099_v3  ;;  %923 = vmatprep.subr.bf16.mxu1 (!%p204_p3), %v1035_v1  ;;  %v1145_v10 = vld [vmem:[%s1270_s2 + $0x58] sm:$0xff] (!%p204_p3)   ;;  %v1167_v13 = vld [vmem:[%s1270_s2 + $0x60] sm:$0xff] (!%p204_p3)   ;;  %v1186_v16 = vld [vmem:[%s1270_s2 + $0x68] sm:$0xff] (!%p204_p3)   ;;  %v493_v19 = vsel (!%p204_p3), %vm491_vm1, 4294967295, %v1037_v18  ;;  %v334_v27 = vunpack.c.l.s4 (!%p204_p3), %v1038_v26  ;;  %v337_v28 = vshrl.u32 (!%p204_p3), %v336_v21, 7  ;;  %vm487_vm3 = vcmask (!%p204_p3), 875520  }
   0xa   : > { %863 = vmatprep.subr.bf16.mxu0 (!%p204_p3), %v1105_v4  ;;  %v1154_v11 = vld [vmem:[%s1270_s2 + $0x98] sm:$0xff] (!%p204_p3)   ;;  %v1172_v14 = vld [vmem:[%s1270_s2 + $0xa0] sm:$0xff] (!%p204_p3)   ;;  %v1192_v17 = vld [vmem:[%s1270_s2 + $0xa8] sm:$0xff] (!%p204_p3)   ;;  %v494_v24 = vsel (!%p204_p3), %vm492_vm2, %v493_v19, 0 }
   0xb   : > { %v1161_v12 = vld [vmem:[%s1270_s2 + $0x18] sm:$0xff] (!%p204_p3)   ;;  %v1179_v15 = vld [vmem:[%s1270_s2 + $0x20] sm:$0xff] (!%p204_p3)   ;;  %v1003_v20 = vld [vmem:[%s1270_s2 + $0x28] sm:$0xff] (!%p204_p3)   ;;  %v335_v32 = vunpack.c.0.s8 (!%p204_p3), %v334_v27 }
   0xc   : > { %924 = vmatpush3.bf16.msra.mxu1 (!%p204_p3), %v1112_v5  ;;  %v1005_v22 = vld [vmem:[%s1270_s2 + $0xb0] sm:$0x3f] (!%p204_p3)   ;;  %v1008_v33 = vld [vmem:[%s1270_s2 + $0x78] sm:$0xff] (!%p204_p3)  }
   0xd   : > { %864 = vmatpush3.bf16.msra.mxu0 (!%p204_p3), %v1118_v6  ;;  %925 = vmatprep.subr.bf16.mxu1 (!%p204_p3), %v1035_v1  ;;  %v1004_v23 = vld [vmem:[%s1270_s2 + $0x70] sm:$0xff] (!%p204_p3)   ;;  %v496_v29 = vand.u32 (!%p204_p3), %v1005_v22, %v494_v24  ;;  %v338_v35 = vsub.s32 (!%p204_p3), %v335_v32, %v337_v28  ;;  %v1009_v37 = vld [vmem:[%s1270_s2 + $0x38] sm:$0xff] (!%p204_p3)  }
   0xe   : > { %865 = vmatprep.subr.bf16.mxu0 %v1123_v7  ;;  %s1278_s15 = smov (!%p251_p4, %s1025_s15), 1  ;;  %v1006_v30 = vld [vmem:[%s1270_s2 + $0x30] sm:$0xff]  }
   0xf   : > { %s957_s25 = smul.u32 6, %s1278_s15  ;;  %s832_s28 = sshll.u32 %s1278_s15, 2 }
  0x10   : > { %926 = vmatpush3.bf16.msra.mxu1 %v1129_v8  ;;  %s275_s5 = scalar_lea.vmem %s1271_s3, %s832_s28  ;;  %s282_s15 = scalar_lea.vmem %s1272_s4, %s832_s28 }
  0x11   : > { %866 = vmatpush3.bf16.msra.mxu0 %v1139_v9  ;;  %927 = vmatprep.subr.bf16.mxu1 %v1035_v1  ;;  %s259_s10 = scalar_lea.vmem %s1268_s0, %s957_s25  ;;  %s268_s21 = scalar_lea.vmem %s1269_s1, %s957_s25 }
  0x12   : > { %867 = vmatprep.subr.bf16.mxu0 %v1145_v10  ;;  %v330_v25 = vld [vmem:[%s259_s10] sm:$0x3f] }
  0x13   : > { %v332_v31 = vcombine.high %v330_v25, %v330_v25  ;;  %v579_v34 = vld [vmem:[%s268_s21] sm:$0x3f]  ;;  %v339_v38 = vrot.slane %v330_v25, %v338_v35 }
  0x14   : > { %928 = vmatpush3.bf16.msra.mxu1 %v1154_v11  ;;  %v588_v39 = vrot.slane %v579_v34, %v338_v35  ;;  %v581_v42 = vcombine.high %v579_v34, %v579_v34 }
  0x15   : > { %868 = vmatpush3.bf16.msra.mxu0 %v1161_v12  ;;  %929 = vmatprep.subr.bf16.mxu1 %v1035_v1  ;;  %v346_v36 = vrot.slane %v332_v31, %v338_v35  ;;  %v347_v40 = vcombine.high %v339_v38, %v339_v38 }
  0x16   : > { %869 = vmatprep.subr.bf16.mxu0 %v1167_v13  ;;  %v596_v41 = vcombine.high %v588_v39, %v588_v39  ;;  %v595_v43 = vrot.slane %v581_v42, %v338_v35 }
  0x17   : > { %530 = vmatprep.mubr.bf16.mxu0 %v347_v40 }
  0x18   : > { %930 = vmatpush3.bf16.msra.mxu1 %v1172_v14 }
  0x19   : > { %870 = vmatpush3.bf16.msra.mxu0 %v1179_v15  ;;  %931 = vmatprep.subr.bf16.mxu1 %v1035_v1 }
  0x1a   : > { %871 = vmatprep.subr.bf16.mxu0 %v1186_v16 }
  0x1c   : > { %932 = vmatpush3.bf16.msra.mxu1 %v1192_v17 }
  0x1d   : > { %872 = vmatpush3.bf16.msra.mxu0 %v1003_v20  ;;  %933 = vmatprep.subr.bf16.mxu1 %v1035_v1 }
  0x1e   : > { %873 = vmatprep.subr.bf16.mxu0 %v1004_v23 }
  0x20   : > { %934 = vmatpush3.bf16.msra.mxu1 %v496_v29 }
  0x21   : > { %874 = vmatpush3.bf16.msra.mxu0 %v1006_v30  ;;  %891 = vmatprep.subr.bf16.mxu1 %v1087_v0 }
  0x22   : > { %875 = vmatprep.subr.bf16.mxu0 %v1008_v33 }
  0x23   : > { %936 = vmatmul.mubr.msk.bf16.vlgmr.msra.gmra.mrb[0].mxu1 %vm487_vm3, %v346_v36 }
  0x24   : > { %892 = vmatpush3.bf16.msra.mxu1 %v1099_v3  ;;  %634 = vmatprep.mubr.bf16.mxu1 %v596_v41 }
  0x25   : > { %876 = vmatpush3.bf16.msra.mxu0 %v1009_v37  ;;  %893 = vmatprep.subr.bf16.mxu1 %v1105_v4 }
  0x26   : > { %939 = vmatprep.subr.bf16.mxu0 %v1035_v1 }
  0x28   : > { %531 = vmatmul.mubr.bf16.vlgmr.msra.gmra.mrb[0].mxu0 %v339_v38  ;;  %894 = vmatpush3.bf16.msra.mxu1 %v1118_v6 }
  0x29   : > { %940 = vmatpush3.bf16.msra.mxu0 %v1093_v2  ;;  %895 = vmatprep.subr.bf16.mxu1 %v1123_v7 }
  0x2a   : > { %941 = vmatprep.subr.bf16.mxu0 %v1035_v1  ;;  %953 = vmatprep.mubr.msk.bf16.mxu0 %vm1036_vm0, %v1035_v1 }
  0x2c   : > { %896 = vmatpush3.bf16.msra.mxu1 %v1139_v9 }
  0x2d   : > { %942 = vmatpush3.bf16.msra.mxu0 %v1112_v5  ;;  %897 = vmatprep.subr.bf16.mxu1 %v1145_v10 }
  0x2e   : > { %943 = vmatprep.subr.bf16.mxu0 %v1035_v1 }
  0x30   : > { %898 = vmatpush3.bf16.msra.mxu1 %v1161_v12 }
  0x31   : > { %944 = vmatpush3.bf16.msra.mxu0 %v1129_v8  ;;  %899 = vmatprep.subr.bf16.mxu1 %v1167_v13 }
  0x32   : > { %945 = vmatprep.subr.bf16.mxu0 %v1035_v1 }
  0x34   : > { %900 = vmatpush3.bf16.msra.mxu1 %v1179_v15 }
  0x35   : > { %946 = vmatpush3.bf16.msra.mxu0 %v1154_v11  ;;  %901 = vmatprep.subr.bf16.mxu1 %v1186_v16 }
  0x36   : > { %947 = vmatprep.subr.bf16.mxu0 %v1035_v1 }
  0x38   : > { %902 = vmatpush3.bf16.msra.mxu1 %v1003_v20 }
  0x39   : > { %948 = vmatpush3.bf16.msra.mxu0 %v1172_v14  ;;  %903 = vmatprep.subr.bf16.mxu1 %v1004_v23 }
  0x3a   : > { %949 = vmatprep.subr.bf16.mxu0 %v1035_v1 }
  0x3c   : > { %904 = vmatpush3.bf16.msra.mxu1 %v1006_v30 }
  0x3d   : > { %950 = vmatpush3.bf16.msra.mxu0 %v1192_v17  ;;  %905 = vmatprep.subr.bf16.mxu1 %v1008_v33 }
  0x3e   : > { %951 = vmatprep.subr.bf16.mxu0 %v1035_v1 }
  0x40   : > { %906 = vmatpush3.bf16.msra.mxu1 %v1009_v37 }
  0x41   : > { %952 = vmatpush3.bf16.msra.mxu0 %v496_v29 }
  0x43   : > { %635 = vmatmul.mubr.bf16.vlgmr.msra.gmra.mrb[4].mxu1 %v588_v39 }
  0x44   : > { %954 = vmatmul.mubr.msk.bf16.vlgmr.msra.gmra.mrb[4].mxu0 %vm487_vm3, %v595_v43 }
  0xf6   : > { %v572_v44 = vpop.f32.mrb[0].mxu1 }
  0xf7   : > { %v937_v45 = vpop.f32.mrb[1].mxu1 }
  0xf8   : > { %v575_v46 = vpop.f32.mrb[2].mxu1 }
  0xf9   : > { %v938_v47 = vpop.f32.mrb[3].mxu1 }
  0xfb   : > { %v877_v48 = vpop.f32.mrb[0].mxu0 }
  0xfc   : > { %v878_v49 = vpop.f32.mrb[1].mxu0 }
  0xfd   : > { %v879_v50 = vadd.f32 %v878_v49, %v877_v48  ;;  %v880_v51 = vpop.f32.mrb[2].mxu0 }
  0xfe   : > { %v881_v52 = vpop.f32.mrb[3].mxu0 }
  0xff   : > { %v573_v53 = vadd.f32 %v879_v50, %v572_v44 }
 0x101   : > { %578 = vst [vmem:[%s275_s5] sm:$0xf] %v573_v53 }
 0x116   : > { %v907_v54 = vpop.f32.mrb[4].mxu1 }
 0x117   : > { %v908_v55 = vpop.f32.mrb[5].mxu1  ;;  %v676_v56 = vpop.f32.mrb[4].mxu0 }
 0x118   : > { %v909_v57 = vadd.f32 %v908_v55, %v907_v54  ;;  %v910_v58 = vpop.f32.mrb[6].mxu1  ;;  %v955_v59 = vpop.f32.mrb[5].mxu0 }
 0x119   : > { %v911_v60 = vpop.f32.mrb[7].mxu1  ;;  %v679_v61 = vpop.f32.mrb[6].mxu0 }
 0x11a   : > { %v677_v62 = vadd.f32 %v909_v57, %v676_v56  ;;  %v956_v63 = vpop.f32.mrb[7].mxu0 }
 0x11c   : > { %682 = vst [vmem:[%s282_s15] sm:$0xf] %v677_v62 }
 0x11d PF: > { %s15_s17 = sadd.s32 1, %s1033_s17   ;;  %s1273_s15 = smov %s1029_s16 }
 0x11e   : > { %p12_p5 = scmp.ge.s32.totalorder %s15_s17, 4   ;;  %s1274_s16 = smov %s1276_s18 }
 0x120   :  { %14 = sbr.rel (!%p12_p5) target bundleno = 2 (0x2), region = 77 }

</bundles_post_ra>
